<compile_context>
chip_gen: v7x
topology: tpu7x:2x2x1
jax: 0.10.0
libtpu: 0.0.40
codegen_flags: <defaults>
</compile_context>

<pallas_src>
import jax
import jax.numpy as jnp
from jax.experimental import pallas as pl
from jax.experimental.pallas import tpu as pltpu


def _dup_kernel(x_ref, o_ref):
    # Pure copy on sublane/lane-dense blocks; the duplication is expressed
    # entirely in the BlockSpec index_maps (the input re-DMA is skipped while
    # its block index stays unchanged along the innermost dupl grid axis).
    o_ref[...] = x_ref[...]


def _round_up(x, m):
    return ((x + m - 1) // m) * m


def _vmem_capacity_bytes():
    try:
        return int(pltpu.get_tpu_info().vmem_capacity_bytes)
    except Exception:
        return 64 << 20  # v7x physical VMEM; safe lower bound on every gen.


def _choose_tiling(n, f, rows, lane, itemsize, target_block_bytes):
    """Pick (batch_chunk, row_chunk) so one block stays under the budget.

    row_chunk is a multiple of 8 (sublane tile) unless it covers the full row
    extent; the batch chunk only shrinks if a single 8-row slab over the whole
    batch is already over budget.
    """
    lane_pad = _round_up(lane, 128)

    def block_bytes(nb, rc):
        return nb * f * _round_up(rc, 8) * lane_pad * itemsize

    nb = n
    while nb > 1 and block_bytes(nb, min(rows, 8)) > target_block_bytes:
        nb = (nb + 1) // 2

    slab = max(1, block_bytes(nb, 8))
    rc = max(8, (target_block_bytes // slab) * 8)
    # Prefer >= 2 row chunks so multi-TC chips (v7x) shard the row axis, not
    # the duplication axis (keeps HBM reads deduplicated).
    if rows >= 16:
        rc = min(rc, _round_up((rows + 1) // 2, 8))
    if rc >= rows:
        rc = rows  # full extent -> always a legal block dim
    return nb, rc


def duplicate_featmaps(x, in_featmaps, dupl_factor, *, target_block_bytes=None):
    """Pallas implementation of DuplicateFeatmaps.forward.

    x: (N, C, H, W), C % in_featmaps == 0, dupl_factor >= 1.
    Returns: (N, dupl_factor * C, H, W)
    """
    n, c, h, w = x.shape
    f = in_featmaps
    assert c % f == 0
    assert dupl_factor >= 1
    if dupl_factor == 1:               # identity: skip the HBM round trip
        return x

    cpf = c // f
    g = cpf * h * w                    # flattened per-group payload
    itemsize = jnp.dtype(x.dtype).itemsize

    # Lane-dense, metadata-only view of the per-group payload.
    if g % 128 == 0:
        rows, lane = g // 128, 128
    else:
        rows, lane = cpf * h, w        # full trailing dim -> legal block shape

    vmem_cap = _vmem_capacity_bytes()
    if target_block_bytes is None:
        # ~8 MiB/buffer on 128 MiB-VMEM chips (v5e/v6e), ~4 MiB on v7x.
        target_block_bytes = min(max(vmem_cap // 16, 1 << 20), 16 << 20)

    nb, rc = _choose_tiling(n, f, rows, lane, itemsize, target_block_bytes)

    x5 = x.reshape(n, f, 1, rows, lane)
    out_shape5 = (n, f, dupl_factor, rows, lane)
    block = (nb, f, 1, rc, lane)

    # dupl axis innermost -> each source chunk is fetched from HBM exactly once.
    grid = (pl.cdiv(n, nb), pl.cdiv(rows, rc), dupl_factor)

    grid_spec = pltpu.PrefetchScalarGridSpec(
        num_scalar_prefetch=0,
        grid=grid,
        in_specs=[pl.BlockSpec(block, lambda bi, gi, di: (bi, 0, 0, gi, 0))],
        out_specs=pl.BlockSpec(block, lambda bi, gi, di: (bi, 0, di, gi, 0)),
    )

    block_bytes = nb * f * _round_up(rc, 8) * _round_up(lane, 128) * itemsize
    vmem_needed = 4 * block_bytes + (4 << 20)      # 2x in + 2x out dbl buffers
    vmem_limit = int(min(max(vmem_needed, 16 << 20), int(0.9 * vmem_cap)))

    in_bytes = n * c * h * w * itemsize
    cost = pl.CostEstimate(flops=0, transcendentals=0,
                           bytes_accessed=(1 + dupl_factor) * in_bytes)

    y = pl.pallas_call(
        _dup_kernel,
        out_shape=jax.ShapeDtypeStruct(out_shape5, x.dtype),
        grid_spec=grid_spec,
        compiler_params=pltpu.CompilerParams(
            dimension_semantics=("parallel", "parallel", "arbitrary"),
            vmem_limit_bytes=vmem_limit),
        cost_estimate=cost,
    )(x5)

    # Matches PyTorch: x.reshape(n_imgs, -1, height, width) — metadata only.
    return y.reshape(n, dupl_factor * c, h, w)


def _reference(x, in_featmaps, dupl_factor):
    n, c, h, w = x.shape
    x5 = x.reshape(n, in_featmaps, c // in_featmaps, h, w)
    xr = jnp.tile(x5, (1, 1, dupl_factor, 1, 1))   # == torch .repeat(1,1,d,1,1)
    return xr.reshape(n, -1, h, w)


if __name__ == "__main__":
    key = jax.random.PRNGKey(0)
    k1, k2 = jax.random.split(key)

    # Module config: in_channels=4, in_featmaps=2 (2 channels per featmap),
    # dupl_factor=3 -> out_channels = 3 * 4 = 12.
    in_channels, in_featmaps, dupl_factor = 4, 2, 3

    # Case A: lane-aligned payload (G = 2*16*16 = 512, multiple of 128).
    xa = jax.random.normal(k1, (2, in_channels, 16, 16), dtype=jnp.float32)
    outa = jax.block_until_ready(duplicate_featmaps(xa, in_featmaps, dupl_factor))
    refa = _reference(xa, in_featmaps, dupl_factor)
    assert outa.shape == refa.shape == (2, dupl_factor * in_channels, 16, 16), (
        outa.shape, refa.shape)
    assert jnp.array_equal(outa, refa), "Pallas output mismatch (case A)"

    # Case B: unaligned payload (G = 2*10*8 = 160) -> (rows, W) path with a
    # partial tail row-chunk.
    xb = jax.random.normal(k2, (2, in_channels, 10, 8), dtype=jnp.float32)
    outb = jax.block_until_ready(duplicate_featmaps(xb, in_featmaps, dupl_factor))
    refb = _reference(xb, in_featmaps, dupl_factor)
    assert outb.shape == refb.shape == (2, dupl_factor * in_channels, 10, 8), (
        outb.shape, refb.shape)
    assert jnp.array_equal(outb, refb), "Pallas output mismatch (case B)"

    # dupl_factor == 1 short-circuit (identity, no pallas_call).
    outc = jax.block_until_ready(duplicate_featmaps(xa, in_featmaps, 1))
    assert jnp.array_equal(outc, xa)

    print("KERNEL_OK")
</pallas_src>

<mosaic_0001>
module attributes {stable_mosaic.version = 11 : i64} {
  func.func @_dup_kernel(%arg0: i32, %arg1: i32, %arg2: i32, %arg3: memref<2x2x1x4x128xf32, #tpu.memory_space<vmem>>, %arg4: memref<2x2x1x4x128xf32, #tpu.memory_space<vmem>>) attributes {dimension_semantics = [#tpu.dimension_semantics<parallel>, #tpu.dimension_semantics<parallel>, #tpu.dimension_semantics<arbitrary>], iteration_bounds = array<i64: 1, 1, 3>, scalar_prefetch = 0 : i64, scratch_operands = 0 : i64, tpu.core_type = #tpu.core_type<tc>, window_params = [{transform_indices = @transform_0, window_bounds = array<i64: 2, 2, 1, 4, 128>}, {transform_indices = @transform_1, window_bounds = array<i64: 2, 2, 1, 4, 128>}]} {
    %c0 = arith.constant 0 : index
    %c0_0 = arith.constant 0 : index
    %c0_1 = arith.constant 0 : index
    %c0_2 = arith.constant 0 : index
    %c0_3 = arith.constant 0 : index
    %0 = vector.load %arg3[%c0, %c0_0, %c0_1, %c0_2, %c0_3] : memref<2x2x1x4x128xf32, #tpu.memory_space<vmem>>, vector<2x2x1x4x128xf32>
    %c0_4 = arith.constant 0 : index
    %c0_5 = arith.constant 0 : index
    %c0_6 = arith.constant 0 : index
    %c0_7 = arith.constant 0 : index
    %c0_8 = arith.constant 0 : index
    %1 = vector.load %arg4[%c0_4, %c0_5, %c0_6, %c0_7, %c0_8] : memref<2x2x1x4x128xf32, #tpu.memory_space<vmem>>, vector<2x2x1x4x128xf32>
    tpu.vector_store %arg4[%c0_4, %c0_5, %c0_6, %c0_7, %c0_8], %0 {strides = array<i32>} : memref<2x2x1x4x128xf32, #tpu.memory_space<vmem>>, vector<2x2x1x4x128xf32>,
    return
  }
  func.func @transform_0(%arg0: i32, %arg1: i32, %arg2: i32) -> (i32, i32, i32, i32, i32) {
    %c0_i32 = arith.constant 0 : i32
    %c0_i32_0 = arith.constant 0 : i32
    %c0_i32_1 = arith.constant 0 : i32
    %c0_i32_2 = arith.constant 0 : i32
    return %arg0, %c0_i32, %c0_i32_0, %arg1, %c0_i32_1 : i32, i32, i32, i32, i32
  }
  func.func @transform_1(%arg0: i32, %arg1: i32, %arg2: i32) -> (i32, i32, i32, i32, i32) {
    %c0_i32 = arith.constant 0 : i32
    %c0_i32_0 = arith.constant 0 : i32
    %c0_i32_1 = arith.constant 0 : i32
    return %arg0, %c0_i32, %arg2, %arg1, %c0_i32_0 : i32, i32, i32, i32, i32
  }
}

</mosaic_0001>

<bundles_post_ra>
// kernel: tpu_custom_call.1
= control target key start
LH: loop header
LB: loop body
LE: loop exit
PB: predicated region body
PF: predicated region fallthrough
CT: control target
= control target key end

     0   :  { %6 = vsyncpa [#allocation3], 0  ;;  %s611_s0 = inlined_call_operand.hbm [shape: f32[2,2,1,4,128], index: 0, kind: input, shape index: {}]   ;;  %s612_s1 = inlined_call_operand.hbm [shape: f32[2,2,3,4,128], index: 1, kind: output, shape index: {}]  }
   0x1   :  { %7 = vsyncpa [#allocation4], 0 }
   0x2   :  { %9 = vsyncpa [#allocation4 + $0x1], 0  ;;  %s463_s6 = smov 0   ;;  %s465_s7 = smov 0  }
   0x3   :  { %s467_s8 = smov 0   ;;  %s469_s9 = smov 0  }
   0x4   :  { %s471_s10 = smov 0   ;;  %s473_s11 = smov 0  }
   0x5 LB: > { %s252_s12 = sadd.s32 4294967295, %s444_s11   ;;  %s253_s13 = sadd.s32 4294967294, %s444_s11   ;;  %s444_s11 = sphi %s473_s11, %s15_s11   ;;  %s440_s10 = sphi %s471_s10, %s630_s10   ;;  %s436_s9 = sphi %s469_s9, %s629_s9   ;;  %s432_s8 = sphi %s467_s8, %s628_s8   ;;  %s428_s7 = sphi %s465_s7, %s627_s7   ;;  %s424_s6 = sphi %s463_s6, %s626_s6  }
   0x6   : > { %s27_s14 = sadd.s32 1, %s440_s10  ;;  %s73_s15 = sadd.s32 1, %s432_s8 }
   0x7   : > { %p28_p0 = scmp.ge.s32.totalorder %s27_s14, 3  ;;  %p83_p1 = scmp.ne.s32.totalorder %s432_s8, %s428_s7 }
   0x8   : > { %p84_p2 = scmp.eq.s32.totalorder %s252_s12, 2  ;;  %p89_p3 = scmp.ne.s32.totalorder %s428_s7, %s424_s6 }
   0x9   : > { %s632_s14 = smov (%p28_p0, %s27_s14), 0  ;;  %p90_p5 = scmp.eq.s32.totalorder %s253_s13, 2 }
   0xa   : > { %p503_p4 = por %p84_p2, %p83_p1  ;;  %s67_s17 = ssub.s32 %s440_s10, %s632_s14 }
   0xb   : > { %p254_p6 = scmp.ge.s32.totalorder %s444_s11, 1  ;;  %p71_p7 = scmp.eq.s32.totalorder %s67_s17, 0 }
   0xc   : > { %s617_s16 = scalar_select %p503_p4, 1, 0 }
   0xd   : > { %p510_p8 = por %p90_p5, %p89_p3  ;;  %p97_p9 = scmp.lt.s32.totalorder %s444_s11, 4 }
   0xe   : > { %s516_s19 = scalar_select %p71_p7, %s432_s8, %s73_s15  }
   0xf   : > { %s618_s18 = scalar_select %p510_p8, 1, 0 }
  0x10   : > { %p518_p10 = pnand %p254_p6, %p97_p9  ;;  %p522_p11 = scmp.eq.s32.totalorder %s252_s12, 0 }
  0x11   : > { %s446_s22 = smov [#allocation2]   ;;  %s334_s27 = scalar_lea.hbm %s611_s0, 256 }
  0x12   : > { %s619_s20 = scalar_select %p518_p10, 1, 0 }
  0x13   : > { %s620_s21 = scalar_select %p522_p11, 1, 0 }
  0x14   : > { %p269_p12 = pneg %p518_p10  ;;  %s114_s23 = sshll.u32 %s446_s22, 4  ;;  %s115_s23 = int_to_ptr.vmem [resolvable:$true] %s114_s23 }
  0x15   : > { %p335_p0 = scmp.ne.s32.totalorder %s611_s0, %s334_s27  ;;  %p341_p5 = scmp.lt.u32.totalorder %s334_s27, %s611_s0 }
  0x16   : > { %p530_p13 = pnand %p522_p11, %p269_p12 }
  0x18   : > { %p336_p1 = pneg %p530_p13 }
  0x1a   : > { %p337_p2 = pnand %p336_p1, %p335_p0 }
  0x1c   : > { %p338_p3 = pneg %p337_p2 }
  0x1e   : > { %p343_p6 = pnand %p341_p5, %p338_p3 }
  0x20   : > { %346 = shalt.err (!%p343_p6)
}
  0x21   : > { %s347_s3 = scalar_lea.vmem %s115_s23, 256  ;;  %p355_p8 = scmp.lt.s32.totalorder %s115_s23, %s115_s23 }
  0x22   : > { %p348_p7 = scmp.ne.s32.totalorder %s115_s23, %s347_s3  ;;  %p356_p4 = scmp.lt.s32.totalorder %s347_s3, %s347_s3 }
  0x24   : > { %p350_p9 = pnand %p348_p7, %p336_p1  ;;  %p357_p11 = por %p356_p4, %p355_p8 }
  0x26   : > { %p351_p12 = pneg %p350_p9 }
  0x28   : > { %p358_p10 = pnand %p357_p11, %p351_p12 }
  0x2a   : > { %361 = shalt.err (!%p358_p10)
}
  0x2b   : > { %s447_s4 = smov 64   ;;  %s448_s5 = smov 4  }
  0x2c   : > { %272 = dma.hbm_to_vmem [thread:$0]  (!%p530_p13), %s611_s0, 256, %s115_s23, [#allocation3], %s447_s4, %s447_s4, %s448_s5  }
  0x2d   : > { %p622_p0 = scmp.ne.s32.totalorder %s619_s20, 0 }
  0x2e   : > { %p623_p2 = scmp.ne.s32.totalorder (!%p622_p0), %s620_s21, 0 }
  0x2f   : > { %130 = sbr.rel (%p622_p0) target bundleno = 83 (0x53), region = 24 }
  0x36   : > { %415 = dma.done.wait (%p623_p2), [#allocation3], 256  }
  0x37   : > { %417 = vsyncadd (%p623_p2), [#allocation3], 4294967040  ;;  %s142_s15 = sand.u32 1, %s428_s7   ;;  %s260_s22 = sshll.u32 %s436_s9, 6  ;;  %v147_v0 = vld [vmem:[#allocation2] sm:$0xff]   ;;  %v149_v1 = vld [vmem:[#allocation2 + $0x8] sm:$0xff]  }
  0x38   : > { %s258_s17 = sshll.u32 %s142_s15, 4  ;;  %s561_s23 = scalar_lea.hbm %s612_s1, %s260_s22 }
  0x39   : > { %s144_s24 = scalar_lea.vmem [#allocation5], %s258_s17  ;;  %s565_s20 = scalar_lea.sflag [#allocation4], %s142_s15 }
  0x3a   : > { %s172_s25 = sshll.u32 %s144_s24, 4  ;;  %151 = vst [vmem:[%s144_s24] sm:$0xff] %v147_v0   ;;  %153 = vst [vmem:[%s144_s24 + $0x8] sm:$0xff] %v149_v1   ;;  %p624_p8 = scmp.ne.s32.totalorder %s617_s16, 0  ;;  %s563_s25 = int_to_ptr.vmem [resolvable:$true] %s172_s25 }
  0x3b   : > { %s362_s21 = scalar_lea.vmem %s563_s25, 256  ;;  %s449_s9 = smov [#allocation5]  }
  0x3c   : > { %p363_p4 = scmp.ne.s32.totalorder %s563_s25, %s362_s21  ;;  %s366_s28 = sshll.u32 %s449_s9, 4  ;;  %s367_s28 = int_to_ptr.vmem [resolvable:$false] %s366_s28 }
  0x3d   : > { %s368_s29 = scalar_lea.vmem %s367_s28, 512  ;;  %p369_p13 = scmp.lt.s32.totalorder %s563_s25, %s367_s28 }
  0x3e   : > { %p364_p10 = pnand %p363_p4, %p624_p8  ;;  %p370_p1 = scmp.lt.s32.totalorder %s368_s29, %s362_s21 }
  0x40   : > { %p365_p11 = pneg %p364_p10  ;;  %p371_p3 = por %p370_p1, %p369_p13 }
  0x42   : > { %p372_p5 = pnand %p371_p3, %p365_p11 }
  0x44   : > { %375 = shalt.err (!%p372_p5)
}
  0x45   : > { %s376_s30 = scalar_lea.hbm %s561_s23, 256  ;;  %s380_s4 = scalar_lea.hbm %s612_s1, 768 }
  0x46   : > { %p377_p6 = scmp.ne.s32.totalorder %s561_s23, %s376_s30  ;;  %p381_p12 = scmp.lt.u32.totalorder %s561_s23, %s612_s1 }
  0x47   : > { %p382_p0 = scmp.lt.u32.totalorder %s380_s4, %s376_s30  ;;  %p384_p4 = scmp.lt.u32.totalorder %s376_s30, %s561_s23 }
  0x48   : > { %p378_p7 = pnand %p377_p6, %p624_p8 }
  0x49   : > { %p383_p2 = por %p382_p0, %p381_p12 }
  0x4a   : > { %p379_p9 = pneg %p378_p7 }
  0x4b   : > { %p385_p10 = por %p384_p4, %p383_p2 }
  0x4d   : > { %p386_p11 = pnand %p385_p10, %p379_p9 }
  0x4f   : > { %389 = shalt.err (!%p386_p11)
}
  0x50   : > { %s450_s13 = smov 64   ;;  %s451_s15 = smov 192  }
  0x51   : > { %s452_s17 = smov 4  }
  0x52   : > { %267 = dma.vmem_to_hbm [thread:$0]  (%p624_p8), %s563_s25, 256, %s561_s23, %s565_s20, %s450_s13, %s451_s15, %s452_s17  }
  0x53 PF: > { %p279_p13 = scmp.ge.s32.totalorder %s444_s11, 2  ;;  %s187_s22 = sand.u32 1, %s424_s6  }
  0x54   : > { %p625_p1 = scmp.ne.s32.totalorder %s618_s18, 0  ;;  %s188_s24 = scalar_lea.sflag [#allocation4], %s187_s22 }
  0x56   : > { %p274_p3 = pnand %p279_p13, %p625_p1 }
  0x58   : > { %419 = dma.done.wait (!%p274_p3), %s188_s24, 256  }
  0x59   : > { %421 = vsyncadd (!%p274_p3), %s188_s24, 4294967040  ;;  %s15_s11 = sadd.s32 1, %s444_s11   ;;  %s626_s6 = smov %s428_s7 }
  0x5a   : > { %p12_p5 = scmp.ge.s32.totalorder %s15_s11, 5   ;;  %s627_s7 = smov %s432_s8 }
  0x5b   : > { %s628_s8 = smov %s516_s19  ;;  %s629_s9 = smov %s440_s10 }
  0x5c   : > { %s630_s10 = smov %s632_s14  ;;  %14 = sbr.rel (!%p12_p5) target bundleno = 5 (0x5), region = 62 }
  0x63   :  { %193 = vsyncpa [#allocation3], 1 }
  0x64   :  { %195 = vsyncpa [#allocation3 + $0x1], 1 }
  0x65   :  { %196 = vsyncpa [#allocation4], 1 }
  0x66   :  { %198 = vsyncpa [#allocation4 + $0x1], 1 }

</bundles_post_ra>
